<compile_context>
chip_gen: v5e
topology: v5e:2x2
jax: 0.10.0
libtpu: 0.0.40
codegen_flags: <defaults>
</compile_context>

<pallas_src>
import jax
import jax.numpy as jnp
from jax import lax
from jax.experimental import pallas as pl
from jax.experimental.pallas import tpu as pltpu

TEMPERATURE = 0.07
BASE_TEMPERATURE = 0.07


def _round_up(x, m):
    return (x + m - 1) // m * m


# ----------------------------- encoder kernel ------------------------------ #
def encoder_kernel(x_ref, w_ref, b_ref, o_ref):
    # grid = (row_blocks, k_blocks); k (reduction over F) is the inner axis.
    # The output block index is constant over k, so o_ref is resident in VMEM
    # and doubles as the f32 accumulator (no scratch needed).
    k = pl.program_id(1)

    @pl.when(k == 0)
    def _():
        o_ref[...] = jnp.zeros_like(o_ref)

    # f32 tile read from HBM, cast to bf16 only for the MXU (f32 accumulation).
    o_ref[...] += jnp.dot(x_ref[...].astype(jnp.bfloat16), w_ref[...],
                          preferred_element_type=jnp.float32)

    @pl.when(k == pl.num_programs(1) - 1)
    def _():
        z = o_ref[...] + b_ref[...]
        # L2 row-normalize; padded lanes of W/b are zero so the norm is exact.
        o_ref[...] = z * lax.rsqrt(jnp.sum(z * z, axis=1, keepdims=True) + 1e-12)


def encode(x_flat, w, b, *, tk=None):
    """(N, F) @ (F, D) + b, row-L2-normalized.  Returns (N, D_pad=128k) f32 with
    the padded lanes identically zero."""
    n, f = x_flat.shape
    d = w.shape[1]
    d_pad = _round_up(d, 128)

    if tk is None:                       # larger k-steps amortize per-step overhead
        f128 = _round_up(f, 128)
        tk = f128 if f128 <= 2048 else 2048
    f_pad = _round_up(f, tk)

    # Row tile: keep >=2 row blocks whenever N allows so the "parallel" axis can
    # shard over both TensorCores on v7x.
    n8 = _round_up(n, 8)
    if n8 >= 256:
        tm = 128
    elif n8 >= 16:
        tm = max(8, _round_up(n8 // 2, 8))
    else:
        tm = n8
    n_pad = _round_up(n, tm)

    # Activations stay f32 (no full bf16 HBM copy); only pad when required.
    if n_pad == n and f_pad == f:
        x_p = x_flat
    else:
        x_p = jnp.pad(x_flat, ((0, n_pad - n), (0, f_pad - f)))
    w_p = jnp.pad(w.astype(jnp.bfloat16), ((0, f_pad - f), (0, d_pad - d)))
    b_p = jnp.pad(b.reshape(1, -1).astype(jnp.float32), ((0, 0), (0, d_pad - d)))

    out = pl.pallas_call(
        encoder_kernel,
        out_shape=jax.ShapeDtypeStruct((n_pad, d_pad), jnp.float32),
        grid=(n_pad // tm, f_pad // tk),
        in_specs=[
            pl.BlockSpec((tm, tk), lambda i, k: (i, k)),       # activations (f32)
            pl.BlockSpec((tk, d_pad), lambda i, k: (k, 0)),    # weights (bf16)
            pl.BlockSpec((1, d_pad), lambda i, k: (0, 0)),     # bias (resident)
        ],
        out_specs=pl.BlockSpec((tm, d_pad), lambda i, k: (i, 0)),
        compiler_params=pltpu.CompilerParams(
            dimension_semantics=("parallel", "arbitrary"),
            vmem_limit_bytes=32 * 1024 * 1024,   # explicit: v5e scoped default is 16 MiB
        ),
    )(x_p, w_p, b_p)
    return out[:n]


# --------------------- SupCon prologue (query-independent) ------------------ #
def ref_stats_kernel(ref_ref, refT_ref, lab_c_ref, lab_r_ref,
                     e_sum_ref, pos_sum_ref, cnt_ref):
    """One-shot: per-reference-anchor statistics over the reference set only.
    All logits are pre-shifted by the stability constant c = 1/T."""
    ref_e = ref_ref[...]                 # (R, Dp) bf16, L2-normalized
    ref_t = refT_ref[...]                # (Dp, R) bf16, pre-transposed in wrapper
    lab_c = lab_c_ref[...]               # (R, 1) int32
    lab_r = lab_r_ref[...]               # (1, R) int32
    R = ref_e.shape[0]
    inv_t = 1.0 / TEMPERATURE

    # Shifted logits s_ij = <r_i, r_j>/T - 1/T  (<= ~0 for unit rows).
    s_rr = jnp.dot(ref_e, ref_t, preferred_element_type=jnp.float32) * inv_t - inv_t

    ri = lax.broadcasted_iota(jnp.int32, (R, R), 0)
    ci = lax.broadcasted_iota(jnp.int32, (R, R), 1)
    not_self = ri != ci                                  # bool, fused via where
    pos = jnp.logical_and(lab_c == lab_r, not_self)      # bool positives among refs

    e_sum_ref[...] = jnp.sum(jnp.where(not_self, jnp.exp(s_rr), 0.0),
                             axis=1, keepdims=True)                    # (R,1)
    pos_sum_ref[...] = jnp.sum(jnp.where(pos, s_rr, 0.0),
                               axis=1, keepdims=True)                  # (R,1)
    cnt_ref[...] = jnp.sum(pos.astype(jnp.float32), axis=1, keepdims=True)


# ------------------------- SupCon per-query-block kernel -------------------- #
def supcon_kernel(ref_ref, qT_ref, lab_c_ref, qlab_ref,
                  e_sum_ref, pos_sum_ref, cnt_ref, loss_ref):
    ref_e = ref_ref[...]                 # (R, Dp) bf16
    q_t = qT_ref[...]                    # (Dp, TB) bf16 (pre-transposed, lane = query)
    lab_c = lab_c_ref[...]               # (R, 1) int32
    qlab = qlab_ref[...]                 # (1, TB) int32 (-1 on padded queries)
    e_rr_sum = e_sum_ref[...]            # (R, 1) f32: sum_{j!=i} exp(s_ij - 1/T)
    sum_pos = pos_sum_ref[...]           # (R, 1) f32: sum over ref positives of (s_ij - 1/T)
    cnt_rr = cnt_ref[...]                # (R, 1) f32: # ref positives per ref anchor
    R = ref_e.shape[0]
    inv_t = 1.0 / TEMPERATURE

    # Shifted query<->reference logits.  c = 1/T is a valid stability max for
    # every anchor (cos <= 1 up to ~1e-3 bf16 rounding; a slightly positive exp
    # argument is numerically harmless and the shift cancels analytically).
    s_rq = jnp.dot(ref_e, q_t, preferred_element_type=jnp.float32) * inv_t - inv_t  # (R,TB)
    e_rq = jnp.exp(s_rq)                                                             # single exp
    pos_rq = lab_c == qlab                                                           # (R,TB) bool
    pos_f = pos_rq.astype(jnp.float32)

    # ---- anchors = reference samples (vectorized over the query lane) ----
    log_den_r = jnp.log(e_rr_sum + e_rq)                    # (R,TB)
    cnt_r = cnt_rr + pos_f                                  # (R,TB)
    sum_lp_r = sum_pos + pos_f * s_rq - cnt_r * log_den_r   # sum of log-probs over positives
    mean_lp_r = sum_lp_r / jnp.maximum(cnt_r, 1.0)          # exact division (tiny counts)

    # ---- anchor = the query sample itself ----
    log_den_q = jnp.log(jnp.sum(e_rq, axis=0, keepdims=True))              # (1,TB)
    cnt_q = jnp.sum(pos_f, axis=0, keepdims=True)
    sum_lp_q = jnp.sum(pos_f * s_rq, axis=0, keepdims=True) - cnt_q * log_den_q
    mean_lp_q = sum_lp_q / jnp.maximum(cnt_q, 1.0)

    total = jnp.sum(mean_lp_r, axis=0, keepdims=True) + mean_lp_q          # (1,TB)
    loss_ref[...] = (-(TEMPERATURE / BASE_TEMPERATURE) / (R + 1.0)) * total


def label_explainer_loss(ref_emb, ref_label, q_emb, q_label, *, tb=128):
    """Per-query-sample SupCon loss over [ref_emb ; emb(img_i)].  Embeddings are
    (., D_pad) f32 with zero padded lanes; similarities run on bf16 MXU inputs."""
    R, d_pad = ref_emb.shape
    B = q_emb.shape[0]
    # tb=128 keeps the per-block output slab lane-dense; on v6e (128 MiB VMEM)
    # tb can be raised to 256-512.  B > tb naturally yields >=2 parallel blocks.
    b_pad = _round_up(B, tb)

    # bf16 operands for the MXU; query operand pre-transposed so the kernel does
    # a plain (R,Dp)x(Dp,TB) dot with no in-kernel relayout.
    ref_bf = ref_emb.astype(jnp.bfloat16)                                   # (R, Dp)
    ref_bf_t = ref_bf.T                                                     # (Dp, R)
    q_bf_t = jnp.pad(q_emb.astype(jnp.bfloat16), ((0, b_pad - B), (0, 0))).T  # (Dp, b_pad)

    ref_lab_col = ref_label.reshape(R, 1).astype(jnp.int32)
    ref_lab_row = ref_label.reshape(1, R).astype(jnp.int32)
    q_lab_row = jnp.concatenate(
        [q_label.astype(jnp.int32), jnp.full((b_pad - B,), -1, jnp.int32)]
    ).reshape(1, b_pad)                                                     # -1 never a positive

    # ---- prologue: query-independent reference statistics (one launch) ----
    e_rr_sum, sum_pos, cnt_rr = pl.pallas_call(
        ref_stats_kernel,
        out_shape=(jax.ShapeDtypeStruct((R, 1), jnp.float32),) * 3,
        grid=(1,),
        in_specs=[
            pl.BlockSpec((R, d_pad), lambda i: (0, 0)),
            pl.BlockSpec((d_pad, R), lambda i: (0, 0)),
            pl.BlockSpec((R, 1), lambda i: (0, 0)),
            pl.BlockSpec((1, R), lambda i: (0, 0)),
        ],
        out_specs=(pl.BlockSpec((R, 1), lambda i: (0, 0)),) * 3,
        compiler_params=pltpu.CompilerParams(vmem_limit_bytes=32 * 1024 * 1024),
    )(ref_bf, ref_bf_t, ref_lab_col, ref_lab_row)

    # ---- per-query-block SupCon; the query axis stays "parallel" (2 TCs) ----
    out = pl.pallas_call(
        supcon_kernel,
        out_shape=jax.ShapeDtypeStruct((1, b_pad), jnp.float32),
        grid=(b_pad // tb,),
        in_specs=[
            pl.BlockSpec((R, d_pad), lambda j: (0, 0)),     # ref embeddings (resident)
            pl.BlockSpec((d_pad, tb), lambda j: (0, j)),    # query block (transposed)
            pl.BlockSpec((R, 1), lambda j: (0, 0)),
            pl.BlockSpec((1, tb), lambda j: (0, j)),
            pl.BlockSpec((R, 1), lambda j: (0, 0)),         # hoisted ref stats
            pl.BlockSpec((R, 1), lambda j: (0, 0)),
            pl.BlockSpec((R, 1), lambda j: (0, 0)),
        ],
        out_specs=pl.BlockSpec((1, tb), lambda j: (0, j)),  # lane-dense loss row
        compiler_params=pltpu.CompilerParams(
            dimension_semantics=("parallel",),
            vmem_limit_bytes=32 * 1024 * 1024,   # safe on v7x; v6e could raise to ~64 MiB
        ),
    )(ref_bf, q_bf_t, ref_lab_col, q_lab_row, e_rr_sum, sum_pos, cnt_rr)
    return out[0, :B]  # (B,)


if __name__ == "__main__":
    key = jax.random.PRNGKey(0)
    k1, k2, k3, k4, k5 = jax.random.split(key, 5)

    B, C, H, W = 2, 4, 16, 16     # query batch (img)
    R = 8                         # reference batch size
    D = 32                        # embedding dim (padded to 128 lanes internally)
    F = C * H * W

    # deterministic synthetic encoder parameters
    w_enc = jax.random.normal(k1, (F, D), jnp.float32) * 0.02
    b_enc = jnp.zeros((1, D), jnp.float32)

    ref_img = jax.random.normal(k2, (R, C, H, W), jnp.float32)
    ref_label = jax.random.randint(k3, (R,), 0, 3)
    img = jax.random.normal(k4, (B, C, H, W), jnp.float32)
    label = jax.random.randint(k5, (B,), 0, 3)

    # Encode reference + query batches in ONE pallas_call, then split rows.
    x_all = jnp.concatenate([ref_img.reshape(R, F), img.reshape(B, F)], axis=0)
    emb_all = encode(x_all, w_enc, b_enc)            # (R+B, 128) f32, lanes D..128 = 0
    ref_emb, q_emb = emb_all[:R], emb_all[R:]

    # "forward": per-sample SupCon loss over [ref_emb ; emb(img_i)].
    loss = label_explainer_loss(ref_emb, ref_label, q_emb, label)
    loss = jax.block_until_ready(loss)

    # --- check 1: encoder vs. an independent pure-f32 reference -------------
    z_ref = x_all @ w_enc + b_enc                     # f32 throughout
    emb_ref = z_ref / jnp.linalg.norm(z_ref, axis=1, keepdims=True)
    assert jnp.allclose(emb_all[:, :D], emb_ref, atol=2e-2, rtol=2e-2), "encoder mismatch"
    assert jnp.allclose(emb_all[:, D:], 0.0), "padded lanes not zero"

    # pure-JAX SupCon reference: literal per-sample loop mirroring PyTorch forward
    def supcon_ref(feats, labs):
        n = feats.shape[0]
        sim = jnp.dot(feats, feats.T, precision=lax.Precision.HIGHEST) / TEMPERATURE
        sim = sim - jnp.max(sim, axis=1, keepdims=True)
        logits_mask = 1.0 - jnp.eye(n)
        pos = (labs[:, None] == labs[None, :]).astype(jnp.float32) * logits_mask
        log_prob = sim - jnp.log(jnp.sum(jnp.exp(sim) * logits_mask, axis=1, keepdims=True))
        cnt = jnp.maximum(jnp.sum(pos, axis=1), 1.0)
        mean_lp = jnp.sum(pos * log_prob, axis=1) / cnt
        return jnp.mean(-(TEMPERATURE / BASE_TEMPERATURE) * mean_lp)

    # --- check 2: SupCon kernel math on the SAME (bf16-rounded) embeddings ---
    ref_emb_bf = ref_emb.astype(jnp.bfloat16).astype(jnp.float32)
    q_emb_bf = q_emb.astype(jnp.bfloat16).astype(jnp.float32)
    ref_losses = []
    for i in range(B):
        feats = jnp.concatenate([ref_emb_bf, q_emb_bf[i:i + 1]], axis=0)
        labs = jnp.concatenate([ref_label, label[i:i + 1]], axis=0)
        ref_losses.append(supcon_ref(feats, labs))
    ref_losses = jnp.stack(ref_losses)
    assert jnp.allclose(loss, ref_losses, atol=2e-3, rtol=2e-3), (loss, ref_losses)

    # --- check 3: end-to-end vs. the fully independent f32 pipeline ---------
    # (looser tolerance: bf16 MXU inputs in both the encoder and the similarities)
    ref_losses_f32 = []
    for i in range(B):
        feats = jnp.concatenate([emb_ref[:R], emb_ref[R + i:R + i + 1]], axis=0)
        labs = jnp.concatenate([ref_label, label[i:i + 1]], axis=0)
        ref_losses_f32.append(supcon_ref(feats, labs))
    ref_losses_f32 = jnp.stack(ref_losses_f32)
    assert jnp.allclose(loss, ref_losses_f32, atol=5e-2, rtol=5e-2), (loss, ref_losses_f32)

    print("KERNEL_OK")
</pallas_src>

<mosaic_0001>
module attributes {stable_mosaic.version = 11 : i64} {
  func.func @encoder_kernel(%arg0: i32, %arg1: i32, %arg2: memref<8x1024xf32, #tpu.memory_space<vmem>>, %arg3: memref<1024x128xbf16, #tpu.memory_space<vmem>>, %arg4: memref<1x128xf32, #tpu.memory_space<vmem>>, %arg5: memref<8x128xf32, #tpu.memory_space<vmem>>) attributes {dimension_semantics = [#tpu.dimension_semantics<parallel>, #tpu.dimension_semantics<arbitrary>], iteration_bounds = array<i64: 2, 1>, scalar_prefetch = 0 : i64, scratch_operands = 0 : i64, tpu.core_type = #tpu.core_type<tc>, window_params = [{transform_indices = @transform_0, window_bounds = array<i64: 8, 1024>}, {transform_indices = @transform_1, window_bounds = array<i64: 1024, 128>}, {pipeline_mode = #tpu.pipeline_mode<synchronous>, transform_indices = @transform_2, window_bounds = array<i64: 1, 128>}, {transform_indices = @transform_3, window_bounds = array<i64: 8, 128>}]} {
    %c0_i32 = arith.constant 0 : i32
    %0 = arith.cmpi eq, %arg1, %c0_i32 : i32
    %1 = arith.extui %0 : i1 to i32
    %c0_i32_0 = arith.constant 0 : i32
    %2 = arith.cmpi ne, %1, %c0_i32_0 : i32
    scf.if %2 {
      %cst_10 = arith.constant 0.000000e+00 : f32
      %13 = vector.broadcast %cst_10 : f32 to vector<8x128xf32>
      %c0_11 = arith.constant 0 : index
      %c0_12 = arith.constant 0 : index
      %14 = vector.load %arg5[%c0_11, %c0_12] : memref<8x128xf32, #tpu.memory_space<vmem>>, vector<8x128xf32>
      tpu.vector_store %arg5[%c0_11, %c0_12], %13 {strides = array<i32>} : memref<8x128xf32, #tpu.memory_space<vmem>>, vector<8x128xf32>,
    } else {
    }
    %c0 = arith.constant 0 : index
    %c0_1 = arith.constant 0 : index
    %3 = vector.load %arg5[%c0, %c0_1] : memref<8x128xf32, #tpu.memory_space<vmem>>, vector<8x128xf32>
    %c0_2 = arith.constant 0 : index
    %c0_3 = arith.constant 0 : index
    %4 = vector.load %arg2[%c0_2, %c0_3] : memref<8x1024xf32, #tpu.memory_space<vmem>>, vector<8x1024xf32>
    %5 = arith.truncf %4 : vector<8x1024xf32> to vector<8x1024xbf16>
    %c0_4 = arith.constant 0 : index
    %c0_5 = arith.constant 0 : index
    %6 = vector.load %arg3[%c0_4, %c0_5] : memref<1024x128xbf16, #tpu.memory_space<vmem>>, vector<1024x128xbf16>
    %cst = arith.constant dense<0.000000e+00> : vector<8x128xf32>
    %7 = tpu.matmul %5, %6, %cst {dimension_numbers = #tpu.dot_dimension_numbers<[1], [0], [0], [1], [0, 0, 1, 1], [], []>} : vector<8x1024xbf16>, vector<1024x128xbf16>, vector<8x128xf32> -> vector<8x128xf32>
    %8 = arith.addf %3, %7 : vector<8x128xf32>
    %c0_6 = arith.constant 0 : index
    %c0_7 = arith.constant 0 : index
    %9 = vector.load %arg5[%c0_6, %c0_7] : memref<8x128xf32, #tpu.memory_space<vmem>>, vector<8x128xf32>
    tpu.vector_store %arg5[%c0_6, %c0_7], %8 {strides = array<i32>} : memref<8x128xf32, #tpu.memory_space<vmem>>, vector<8x128xf32>,
    %c0_i32_8 = arith.constant 0 : i32
    %10 = arith.cmpi eq, %arg1, %c0_i32_8 : i32
    %11 = arith.extui %10 : i1 to i32
    %c0_i32_9 = arith.constant 0 : i32
    %12 = arith.cmpi ne, %11, %c0_i32_9 : i32
    scf.if %12 {
      %c0_10 = arith.constant 0 : index
      %c0_11 = arith.constant 0 : index
      %13 = vector.load %arg5[%c0_10, %c0_11] : memref<8x128xf32, #tpu.memory_space<vmem>>, vector<8x128xf32>
      %c0_12 = arith.constant 0 : index
      %c0_13 = arith.constant 0 : index
      %14 = vector.load %arg4[%c0_12, %c0_13] : memref<1x128xf32, #tpu.memory_space<vmem>>, vector<1x128xf32>
      %15 = vector.broadcast %14 : vector<1x128xf32> to vector<8x128xf32>
      %16 = arith.addf %13, %15 : vector<8x128xf32>
      %17 = arith.mulf %16, %16 : vector<8x128xf32>
      %cst_14 = arith.constant dense<0.000000e+00> : vector<8xf32>
      %18 = vector.multi_reduction <add>, %17, %cst_14 [1] : vector<8x128xf32> to vector<8xf32>
      %19 = vector.shape_cast %18 : vector<8xf32> to vector<8x1xf32>
      %cst_15 = arith.constant 9.99999996E-13 : f32
      %20 = vector.broadcast %cst_15 : f32 to vector<8x1xf32>
      %21 = arith.addf %19, %20 : vector<8x1xf32>
      %22 = math.rsqrt %21 : vector<8x1xf32>
      %23 = vector.broadcast %22 : vector<8x1xf32> to vector<8x128xf32>
      %24 = arith.mulf %16, %23 : vector<8x128xf32>
      %c0_16 = arith.constant 0 : index
      %c0_17 = arith.constant 0 : index
      %25 = vector.load %arg5[%c0_16, %c0_17] : memref<8x128xf32, #tpu.memory_space<vmem>>, vector<8x128xf32>
      tpu.vector_store %arg5[%c0_16, %c0_17], %24 {strides = array<i32>} : memref<8x128xf32, #tpu.memory_space<vmem>>, vector<8x128xf32>,
    } else {
    }
    return
  }
  func.func @transform_0(%arg0: i32, %arg1: i32) -> (i32, i32) {
    %c0_i32 = arith.constant 0 : i32
    return %arg0, %arg1 : i32, i32
  }
  func.func @transform_1(%arg0: i32, %arg1: i32) -> (i32, i32) {
    %c0_i32 = arith.constant 0 : i32
    %c0_i32_0 = arith.constant 0 : i32
    return %arg1, %c0_i32 : i32, i32
  }
  func.func @transform_2(%arg0: i32, %arg1: i32) -> (i32, i32) {
    %c0_i32 = arith.constant 0 : i32
    %c0_i32_0 = arith.constant 0 : i32
    %c0_i32_1 = arith.constant 0 : i32
    return %c0_i32, %c0_i32_0 : i32, i32
  }
  func.func @transform_3(%arg0: i32, %arg1: i32) -> (i32, i32) {
    %c0_i32 = arith.constant 0 : i32
    %c0_i32_0 = arith.constant 0 : i32
    return %arg0, %c0_i32 : i32, i32
  }
}

</mosaic_0001>

<bundles_post_ra>
// kernel: tpu_custom_call.1
= control target key start
LH: loop header
LB: loop body
LE: loop exit
PB: predicated region body
PF: predicated region fallthrough
CT: control target
= control target key end

     0   :  { %8 = vsyncpa [#allocation3], 0  ;;  %s1750_s0 = inlined_call_operand.hbm [shape: f32[16,1024], index: 0, kind: input, shape index: {}]   ;;  %s1751_s1 = inlined_call_operand.hbm [shape: bf16[1024,128], index: 1, kind: input, shape index: {}]   ;;  %s1752_s2 = inlined_call_operand.vmem [shape: f32[1,128], index: 2, kind: input, shape index: {}]   ;;  %s1753_s3 = inlined_call_operand.hbm [shape: f32[16,128], index: 3, kind: output, shape index: {}]  }
   0x1   :  { %10 = vsyncpa [#allocation3 + $0x1], 0 }
   0x2   :  { %11 = vsyncpa [#allocation6], 0 }
   0x3   :  { %12 = vsyncpa [#allocation4], 0 }
   0x4   :  { %14 = vsyncpa [#allocation4 + $0x1], 0  ;;  %s1593_s12 = smov 0   ;;  %s1595_s13 = smov 0  }
   0x5   :  { %s1597_s14 = smov 0   ;;  %s1599_s15 = smov 0  }
   0x6   :  { %s1601_s16 = smov 0   ;;  %s1603_s17 = smov 0  }
   0x7 LB: > { %s1006_s18 = sadd.s32 4294967295, %s1568_s17   ;;  %p1008_p0 = scmp.ge.s32.totalorder %s1568_s17, 1  ;;  %s1568_s17 = sphi %s1603_s17, %s20_s17   ;;  %s1564_s16 = sphi %s1601_s16, %s1764_s16   ;;  %s1560_s15 = sphi %s1599_s15, %s1763_s15   ;;  %s1556_s14 = sphi %s1597_s14, %s1762_s14   ;;  %s1552_s13 = sphi %s1595_s13, %s1761_s13   ;;  %s1548_s12 = sphi %s1593_s12, %s1760_s12  }
   0x8   : > { %p1625_p1 = scmp.eq.s32.totalorder %s1006_s18, 0  ;;  %p138_p2 = scmp.lt.s32.totalorder %s1568_s17, 3 }
   0x9   : > { %s152_s22 = sshll.u32 %s1751_s1, 4  ;;  %s1570_s24 = smov [#allocation5]   ;;  %s153_s22 = int_to_ptr.hbm [resolvable:$true] %s152_s22 }
   0xa   : > { %p1633_p3 = pnand %p1008_p0, %p138_p2  ;;  %s154_s25 = sshll.u32 %s1570_s24, 4  ;;  %s155_s25 = int_to_ptr.vmem [resolvable:$true] %s154_s25 }
   0xb   : > { %p1010_p6 = scmp.ge.s32.totalorder %s1568_s17, 2  ;;  %s1571_s26 = smov 64  }
   0xc   : > { %p1351_p4 = pneg %p1633_p3  ;;  %s1572_s27 = smov 4  }
   0xd   : > { %s1007_s28 = sadd.s32 4294967294, %s1568_s17   ;;  %s32_s29 = sadd.s32 1, %s1564_s16 }
   0xe   : > { %p1352_p5 = pnand %p1351_p4, %p1625_p1  ;;  %s41_s30 = sadd.s32 1, %s1556_s14 }
   0xf   : > { %p34_p7 = scmp.ge.s32.totalorder %s32_s29, 2  ;;  %p48_p8 = scmp.ne.s32.totalorder %s1556_s14, %s1552_s13 }
  0x10   : > { %1354 = dma.hbm_to_vmem [thread:$0]  (!%p1352_p5), %s153_s22, 8192, %s155_s25, [#allocation6], %s1571_s26, %s1571_s26, %s1572_s27  }
  0x11   : > { %p49_p9 = scmp.eq.s32.totalorder %s1568_s17, 0  ;;  %p54_p10 = scmp.ne.s32.totalorder %s1552_s13, %s1548_s12 }
  0x12   : > { %s1766_s29 = smov (%p34_p7, %s32_s29), 0  ;;  %p125_p13 = scmp.eq.s32.totalorder %s1006_s18, 1 }
  0x13   : > { %p1652_p11 = por %p49_p9, %p48_p8  ;;  %p1658_p12 = por %p1625_p1, %p54_p10 }
  0x14   : > { %s36_s6 = ssub.s32 %s1564_s16, %s1766_s29  ;;  %p131_p2 = scmp.eq.s32.totalorder %s1007_s28, 1 }
  0x15   : > { %p39_p0 = scmp.eq.s32.totalorder %s36_s6, 0  ;;  %p1664_p4 = por %p125_p13, %p48_p8 }
  0x16   : > { %p1364_p5 = scmp.lt.s32.totalorder %s1568_s17, 2  ;;  %p1672_p7 = por %p131_p2, %p54_p10 }
  0x17   : > { %s1670_s8 = scalar_select %p39_p0, %s1556_s14, %s41_s30  }
  0x18   : > { %s171_s10 = sand.u32 1, %s1556_s14   ;;  %s1278_s20 = sshll.u32 %s1564_s16, 6 }
  0x19   : > { %s1011_s11 = sshll.u32 %s171_s10, 6  ;;  %s182_s18 = scalar_lea.hbm %s1750_s0, %s1278_s20 }
  0x1a   : > { %s175_s24 = scalar_lea.vmem [#allocation2], %s1011_s11  ;;  %s184_s26 = sshll.u32 %s182_s18, 4  ;;  %s185_s26 = int_to_ptr.hbm [resolvable:$true] %s184_s26 }
  0x1b   : > { %s186_s25 = sshll.u32 %s175_s24, 4  ;;  %p1356_p8 = pnand %p1364_p5, %p1652_p11  ;;  %s187_s25 = int_to_ptr.vmem [resolvable:$true] %s186_s25 }
  0x1c   : > { %s172_s27 = scalar_lea.sflag [#allocation3], %s171_s10  ;;  %195 = sbr.rel (%p1633_p3) target bundleno = 383 (0x17f), region = 32 }
  0x1d   : > { %1358 = dma.hbm_to_vmem [thread:$0]  (!%p1356_p8), %s185_s26, 1024, %s187_s25, %s172_s27  }
  0x1e   : > { %s1686_s28 = sand.u32 (!%p1633_p3), 1, %s1552_s13  }
  0x1f   : > { %s1015_s30 = sshll.u32 (!%p1633_p3), %s1686_s28, 6  ;;  %s198_s6 = scalar_lea.sflag (!%p1633_p3), [#allocation3], %s1686_s28 }
  0x20   : > { %s1690_s11 = scalar_lea.vmem (!%p1633_p3), [#allocation2], %s1015_s30 }
  0x21   : > { %1535 = dma.done.wait (%p1658_p12), %s198_s6, 1024  }
  0x22   : > { %1537 = vsyncadd (%p1658_p12), %s198_s6, 4294966272 }
  0x23   : > { %1539 = dma.done.wait (%p1625_p1), [#allocation6], 8192  }
  0x24   : > { %1541 = vsyncadd (%p1625_p1), [#allocation6], 4294959104  ;;  %v1286_v0 = vld [vmem:[#allocation5 + $0x38] sm:$0xff]  ;;  %v1285_v4 = vld [vmem:[#allocation5 + $0x30] sm:$0xff]  ;;  %s1017_s4 = sshll.u32 %s1686_s28, 3  ;;  %s1275_s5 = sshll.u32 %s1560_s15, 3 }
  0x25   : > { %v1294_v1 = vld [vmem:[#allocation5 + $0x78] sm:$0xff]  ;;  %766 = vmatpush.bf16.msra.mxu0 %v1286_v0  ;;  %v1293_v5 = vld [vmem:[#allocation5 + $0x70] sm:$0xff]  ;;  %v1284_v8 = vld [vmem:[#allocation5 + $0x28] sm:$0xff]  ;;  %s908_s21 = scalar_lea.hbm %s1753_s3, %s1275_s5  ;;  %s229_s22 = scalar_lea.vmem [#allocation7], %s1017_s4 }
  0x26   : > { %v1302_v2 = vld [vmem:[#allocation5 + $0xb8] sm:$0xff]  ;;  %779 = vmatpush.bf16.msra.mxu1 %v1294_v1  ;;  %v1301_v6 = vld [vmem:[#allocation5 + $0xb0] sm:$0xff]  ;;  %v1292_v9 = vld [vmem:[#allocation5 + $0x68] sm:$0xff]  ;;  %s910_s18 = sshll.u32 %s229_s22, 4  ;;  %s912_s24 = sshll.u32 %s908_s21, 4  ;;  %s911_s18 = int_to_ptr.vmem [resolvable:$true] %s910_s18  ;;  %s913_s24 = int_to_ptr.hbm [resolvable:$true] %s912_s24 }
  0x27   : > { %v1310_v3 = vld [vmem:[#allocation5 + $0xf8] sm:$0xff]  ;;  %792 = vmatpush.bf16.msra.mxu2 %v1302_v2  ;;  %v1309_v7 = vld [vmem:[#allocation5 + $0xf0] sm:$0xff]  ;;  %v1300_v10 = vld [vmem:[#allocation5 + $0xa8] sm:$0xff]  ;;  %s898_s15 = scalar_lea.sflag [#allocation4], %s1686_s28  ;;  %s1496_s25 = sshra.s32 %s913_s24, 4  ;;  %s1497_s25 = int_to_ptr.hbm [resolvable:$true] %s1496_s25 }
  0x28   : > { %805 = vmatpush.bf16.msra.mxu3 %v1310_v3  ;;  %v1308_v11 = vld [vmem:[#allocation5 + $0xe8] sm:$0xff]  ;;  %v1283_v12 = vld [vmem:[#allocation5 + $0x20] sm:$0xff]  ;;  %v1282_v16 = vld [vmem:[#allocation5 + $0x18] sm:$0xff]  ;;  %s1498_s26 = scalar_lea.hbm %s1497_s25, 8  ;;  %s1502_s6 = scalar_lea.hbm %s1753_s3, 16 }
  0x29   : > { %767 = vmatpush.bf16.msra.mxu0 %v1285_v4  ;;  %v1291_v13 = vld [vmem:[#allocation5 + $0x60] sm:$0xff]  ;;  %v1290_v17 = vld [vmem:[#allocation5 + $0x58] sm:$0xff]  ;;  %v1281_v20 = vld [vmem:[#allocation5 + $0x10] sm:$0xff]  ;;  %p1499_p1 = scmp.ne.s32.totalorder %s1497_s25, %s1498_s26  ;;  %p1503_p10 = scmp.lt.s32.totalorder %s1497_s25, %s1753_s3 }
  0x2a   : > { %780 = vmatpush.bf16.msra.mxu1 %v1293_v5  ;;  %v1299_v14 = vld [vmem:[#allocation5 + $0xa0] sm:$0xff]  ;;  %v1298_v18 = vld [vmem:[#allocation5 + $0x98] sm:$0xff]  ;;  %v1289_v21 = vld [vmem:[#allocation5 + $0x50] sm:$0xff]  ;;  %p1504_p11 = scmp.lt.s32.totalorder %s1502_s6, %s1498_s26 }
  0x2b   : > { %793 = vmatpush.bf16.msra.mxu2 %v1301_v6  ;;  %v1307_v15 = vld [vmem:[#allocation5 + $0xe0] sm:$0xff]  ;;  %v1306_v19 = vld [vmem:[#allocation5 + $0xd8] sm:$0xff]  ;;  %v1297_v22 = vld [vmem:[#allocation5 + $0x90] sm:$0xff]  ;;  %p1500_p3 = pnand %p1499_p1, %p1664_p4 }
  0x2c   : > { %806 = vmatpush.bf16.msra.mxu3 %v1309_v7  ;;  %v1305_v23 = vld [vmem:[#allocation5 + $0xd0] sm:$0xff]  ;;  %v1280_v24 = vld [vmem:[#allocation5 + $0x8] sm:$0xff]  ;;  %v1279_v28 = vld [vmem:[#allocation5] sm:$0xff]  ;;  %p1505_p12 = por %p1504_p11, %p1503_p10 }
  0x2d   : > { %768 = vmatpush.bf16.msra.mxu0 %v1284_v8  ;;  %v1288_v25 = vld [vmem:[#allocation5 + $0x48] sm:$0xff]  ;;  %v1287_v29 = vld [vmem:[#allocation5 + $0x40] sm:$0xff]  ;;  %v1318_v32 = vld [vmem:[#allocation5 + $0x138] sm:$0xff]  ;;  %p1501_p9 = pneg %p1500_p3 }
  0x2e   : > { %781 = vmatpush.bf16.msra.mxu1 %v1292_v9  ;;  %v1296_v26 = vld [vmem:[#allocation5 + $0x88] sm:$0xff]  ;;  %v1295_v30 = vld [vmem:[#allocation5 + $0x80] sm:$0xff]  ;;  %v240_v33 = vld [vmem:[%s1690_s11 + $0x10] sm:$0xff] }
  0x2f   : > { %794 = vmatpush.bf16.msra.mxu2 %v1300_v10  ;;  %v1304_v27 = vld [vmem:[#allocation5 + $0xc8] sm:$0xff]  ;;  %v1303_v31 = vld [vmem:[#allocation5 + $0xc0] sm:$0xff]  ;;  %v1326_v35 = vld [vmem:[#allocation5 + $0x178] sm:$0xff]  ;;  %v248_v40 = vpack.c.bf16 %v240_v33, %v240_v33  ;;  %p1506_p13 = pnand %p1505_p12, %p1501_p9 }
  0x30   : > { %807 = vmatpush.bf16.msra.mxu3 %v1308_v11  ;;  %v238_v34 = vld [vmem:[%s1690_s11] sm:$0xff]  ;;  %v241_v36 = vld [vmem:[%s1690_s11 + $0x18] sm:$0xff]  ;;  %v239_v37 = vld [vmem:[%s1690_s11 + $0x8] sm:$0xff] }
  0x31   : > { %769 = vmatpush.bf16.msra.mxu0 %v1283_v12  ;;  %v1334_v38 = vld [vmem:[#allocation5 + $0x1b8] sm:$0xff]  ;;  %v246_v41 = vpack.c.bf16 %v238_v34, %v238_v34  ;;  %v249_v42 = vpack.c.bf16 %v241_v36, %v241_v36  ;;  %v247_v43 = vpack.c.bf16 %v239_v37, %v239_v37  ;;  %v1317_v44 = vld [vmem:[#allocation5 + $0x130] sm:$0xff]  ;;  %v1316_v48 = vld [vmem:[#allocation5 + $0x128] sm:$0xff] }
  0x32   : > { %782 = vmatpush.bf16.msra.mxu1 %v1291_v13  ;;  %v1342_v39 = vld [vmem:[#allocation5 + $0x1f8] sm:$0xff]  ;;  %v1325_v45 = vld [vmem:[#allocation5 + $0x170] sm:$0xff]  ;;  %v1324_v49 = vld [vmem:[#allocation5 + $0x168] sm:$0xff] }
  0x33   : > { %795 = vmatpush.bf16.msra.mxu2 %v1299_v14  ;;  %v1333_v46 = vld [vmem:[#allocation5 + $0x1b0] sm:$0xff]  ;;  %v1332_v50 = vld [vmem:[#allocation5 + $0x1a8] sm:$0xff]  ;;  %v1315_v52 = vld [vmem:[#allocation5 + $0x120] sm:$0xff] }
  0x34   : > { %808 = vmatpush.bf16.msra.mxu3 %v1307_v15  ;;  %v1341_v47 = vld [vmem:[#allocation5 + $0x1f0] sm:$0xff]  ;;  %v1340_v51 = vld [vmem:[#allocation5 + $0x1e8] sm:$0xff]  ;;  %v1323_v53 = vld [vmem:[#allocation5 + $0x160] sm:$0xff] }
  0x35   : > { %770 = vmatpush.bf16.msra.mxu0 %v1282_v16  ;;  %v1331_v54 = vld [vmem:[#allocation5 + $0x1a0] sm:$0xff]  ;;  %v1314_v56 = vld [vmem:[#allocation5 + $0x118] sm:$0xff]  ;;  %v1313_v60 = vld [vmem:[#allocation5 + $0x110] sm:$0xff] }
  0x36   : > { %783 = vmatpush.bf16.msra.mxu1 %v1290_v17  ;;  %v1339_v55 = vld [vmem:[#allocation5 + $0x1e0] sm:$0xff]  ;;  %v1322_v57 = vld [vmem:[#allocation5 + $0x158] sm:$0xff]  ;;  %v1321_v61 = vld [vmem:[#allocation5 + $0x150] sm:$0xff] }
  0x37   : > { %796 = vmatpush.bf16.msra.mxu2 %v1298_v18  ;;  %v1330_v58 = vld [vmem:[#allocation5 + $0x198] sm:$0xff]  ;;  %v1329_v62 = vld [vmem:[#allocation5 + $0x190] sm:$0xff]  ;;  %v1312_v0 = vld [vmem:[#allocation5 + $0x108] sm:$0xff] }
  0x38   : > { %809 = vmatpush.bf16.msra.mxu3 %v1306_v19  ;;  %v1338_v59 = vld [vmem:[#allocation5 + $0x1d8] sm:$0xff]  ;;  %v1337_v63 = vld [vmem:[#allocation5 + $0x1d0] sm:$0xff]  ;;  %v1320_v1 = vld [vmem:[#allocation5 + $0x148] sm:$0xff] }
  0x39   : > { %771 = vmatpush.bf16.msra.mxu0 %v1281_v20  ;;  %v1328_v2 = vld [vmem:[#allocation5 + $0x188] sm:$0xff]  ;;  %v1311_v4 = vld [vmem:[#allocation5 + $0x100] sm:$0xff]  ;;  %v244_v10 = vld [vmem:[%s1690_s11 + $0x30] sm:$0xff] }
  0x3a   : > { %784 = vmatpush.bf16.msra.mxu1 %v1289_v21  ;;  %v1336_v3 = vld [vmem:[#allocation5 + $0x1c8] sm:$0xff]  ;;  %v1319_v5 = vld [vmem:[#allocation5 + $0x140] sm:$0xff]  ;;  %v245_v11 = vld [vmem:[%s1690_s11 + $0x38] sm:$0xff]  ;;  %v252_v14 = vpack.c.bf16 %v244_v10, %v244_v10 }
  0x3b   : > { %797 = vmatpush.bf16.msra.mxu2 %v1297_v22  ;;  %v1327_v6 = vld [vmem:[#allocation5 + $0x180] sm:$0xff]  ;;  %v243_v8 = vld [vmem:[%s1690_s11 + $0x28] sm:$0xff]  ;;  %v253_v15 = vpack.c.bf16 %v245_v11, %v245_v11 }
  0x3c   : > { %810 = vmatpush.bf16.msra.mxu3 %v1305_v23  ;;  %v242_v7 = vld [vmem:[%s1690_s11 + $0x20] sm:$0xff]  ;;  %v251_v13 = vpack.c.bf16 %v243_v8, %v243_v8 }
  0x3d   : > { %772 = vmatpush.bf16.msra.mxu0 %v1280_v24  ;;  %v1335_v9 = vld [vmem:[#allocation5 + $0x1c0] sm:$0xff]  ;;  %v250_v12 = vpack.c.bf16 %v242_v7, %v242_v7 }
  0x3e   : > { %785 = vmatpush.bf16.msra.mxu1 %v1288_v25  ;;  %v1419_v37 = vld [vmem:[%s1752_s2] ss:$0 sm:$0xff] }
  0x3f   : > { %798 = vmatpush.bf16.msra.mxu2 %v1296_v26 }
  0x40   : > { %811 = vmatpush.bf16.msra.mxu3 %v1304_v27 }
  0x41   : > { %773 = vmatpush.bf16.msra.mxu0 %v1279_v28 }
  0x42   : > { %786 = vmatpush.bf16.msra.mxu1 %v1287_v29 }
  0x43   : > { %799 = vmatpush.bf16.msra.mxu2 %v1295_v30 }
  0x44   : > { %812 = vmatpush.bf16.msra.mxu3 %v1303_v31  ;;  %774 = vmatmul.bf16.vlgmr.msra.gmra.mxu0 %v246_v41 }
  0x45   : > { %818 = vmatpush.bf16.msrb.mxu0 %v1318_v32  ;;  %787 = vmatmul.bf16.vlgmr.msra.gmra.mxu1 %v247_v43 }
  0x46   : > { %831 = vmatpush.bf16.msrb.mxu1 %v1326_v35  ;;  %800 = vmatmul.bf16.vlgmr.msra.gmra.mxu2 %v248_v40 }
  0x47   : > { %844 = vmatpush.bf16.msrb.mxu2 %v1334_v38  ;;  %813 = vmatmul.bf16.vlgmr.msra.gmra.mxu3 %v249_v42 }
  0x48   : > { %857 = vmatpush.bf16.msrb.mxu3 %v1342_v39 }
  0x49   : > { %819 = vmatpush.bf16.msrb.mxu0 %v1317_v44 }
  0x4a   : > { %832 = vmatpush.bf16.msrb.mxu1 %v1325_v45 }
  0x4b   : > { %845 = vmatpush.bf16.msrb.mxu2 %v1333_v46 }
  0x4c   : > { %858 = vmatpush.bf16.msrb.mxu3 %v1341_v47 }
  0x4d   : > { %820 = vmatpush.bf16.msrb.mxu0 %v1316_v48 }
  0x4e   : > { %833 = vmatpush.bf16.msrb.mxu1 %v1324_v49 }
  0x4f   : > { %846 = vmatpush.bf16.msrb.mxu2 %v1332_v50 }
  0x50   : > { %859 = vmatpush.bf16.msrb.mxu3 %v1340_v51 }
  0x51   : > { %821 = vmatpush.bf16.msrb.mxu0 %v1315_v52 }
  0x52   : > { %834 = vmatpush.bf16.msrb.mxu1 %v1323_v53 }
  0x53   : > { %847 = vmatpush.bf16.msrb.mxu2 %v1331_v54 }
  0x54   : > { %860 = vmatpush.bf16.msrb.mxu3 %v1339_v55 }
  0x55   : > { %822 = vmatpush.bf16.msrb.mxu0 %v1314_v56 }
  0x56   : > { %835 = vmatpush.bf16.msrb.mxu1 %v1322_v57 }
  0x57   : > { %848 = vmatpush.bf16.msrb.mxu2 %v1330_v58 }
  0x58   : > { %861 = vmatpush.bf16.msrb.mxu3 %v1338_v59 }
  0x59   : > { %823 = vmatpush.bf16.msrb.mxu0 %v1313_v60 }
  0x5a   : > { %836 = vmatpush.bf16.msrb.mxu1 %v1321_v61 }
  0x5b   : > { %849 = vmatpush.bf16.msrb.mxu2 %v1329_v62 }
  0x5c   : > { %862 = vmatpush.bf16.msrb.mxu3 %v1337_v63 }
  0x5d   : > { %824 = vmatpush.bf16.msrb.mxu0 %v1312_v0 }
  0x5e   : > { %837 = vmatpush.bf16.msrb.mxu1 %v1320_v1 }
  0x5f   : > { %850 = vmatpush.bf16.msrb.mxu2 %v1328_v2 }
  0x60   : > { %863 = vmatpush.bf16.msrb.mxu3 %v1336_v3 }
  0x61   : > { %825 = vmatpush.bf16.msrb.mxu0 %v1311_v4 }
  0x62   : > { %838 = vmatpush.bf16.msrb.mxu1 %v1319_v5 }
  0x63   : > { %851 = vmatpush.bf16.msrb.mxu2 %v1327_v6 }
  0x64   : > { %864 = vmatpush.bf16.msrb.mxu3 %v1335_v9  ;;  %826 = vmatmul.bf16.vlgmr.msrb.gmra.mxu0 %v250_v12 }
  0x65   : > { %839 = vmatmul.bf16.vlgmr.msrb.gmra.mxu1 %v251_v13 }
  0x66   : > { %852 = vmatmul.bf16.vlgmr.msrb.gmra.mxu2 %v252_v14 }
  0x67   : > { %865 = vmatmul.bf16.vlgmr.msrb.gmra.mxu3 %v253_v15 }
  0xc1   : > { %v775_v16 = vpop.f32.mrf.mxu0 }
  0xc2   : > { %v788_v17 = vpop.f32.mrf.mxu1 }
  0xc3   : > { %v789_v24 = vadd.f32 %v788_v17, %v775_v16 }
  0xc9   : > { %v801_v18 = vpop.f32.mrf.mxu2  ;;  %v777_v20 = vpop.f32.mrf.mxu0 }
  0xca   : > { %v814_v19 = vpop.f32.mrf.mxu3  ;;  %v790_v21 = vpop.f32.mrf.mxu1  ;;  %v802_v25 = vadd.f32 %v801_v18, %v789_v24 }
  0xcc   : > { %v815_v26 = vadd.f32 %v814_v19, %v802_v25 }
  0xd1   : > { %v803_v22 = vpop.f32.mrf.mxu2 }
  0xd2   : > { %v816_v23 = vpop.f32.mrf.mxu3 }
  0xe1   : > { %v827_v27 = vpop.f32.mrf.mxu0 }
  0xe2   : > { %v840_v28 = vpop.f32.mrf.mxu1  ;;  %v828_v29 = vadd.f32 %v827_v27, %v815_v26 }
  0xe4   : > { %v841_v30 = vadd.f32 %v840_v28, %v828_v29 }
  0xe9   : > { %v853_v31 = vpop.f32.mrf.mxu2  ;;  %v829_v34 = vpop.f32.mrf.mxu0 }
  0xea   : > { %v866_v32 = vpop.f32.mrf.mxu3  ;;  %v854_v33 = vadd.f32 %v853_v31, %v841_v30  ;;  %v842_v35 = vpop.f32.mrf.mxu1 }
  0xec   : > { %v867_v36 = vadd.f32 %v866_v32, %v854_v33 }
  0xee   : > { %v880_v38 = vadd.f32 %v1419_v37, %v867_v36 }
  0xf0   : > { %v881_v41 = vmul.f32 %v880_v38, %v880_v38 }
  0xf1   : > { %v855_v39 = vpop.f32.mrf.mxu2 }
  0xf2   : > { %v868_v40 = vpop.f32.mrf.mxu3  ;;  %882 = vadd.xlane.f32.xlu0 %v881_v41 }
 0x165   : > { %v883_v42 = vpop.xlane.xlu0 %882 }
 0x166   : > { %v884_v43 = vadd.f32 1e-12, %v883_v42 }
 0x168   : > { %1420 = vrsqrt.f32 %v884_v43  ;;  %vm891_vm1 = vweird.f32 %v884_v43 }
 0x16e   : > { %v1421_v44 = vpop.eup %1420 }
 0x16f   : > { %v886_v45 = vmul.f32 %v1421_v44, %v884_v43  ;;  %vm892_vm0 = vweird.f32 %v1421_v44 }
 0x170   : > { %vm893_vm2 = vmor %vm891_vm1, %vm892_vm0 }
 0x171   : > { %v887_v46 = vmul.f32 %v1421_v44, %v886_v45 }
 0x173   : > { %v888_v47 = vmul.f32 0.5, %v887_v46 }
 0x175   : > { %v889_v48 = vsub.f32 1.5, %v888_v47 }
 0x177   : > { %v890_v49 = vmul.f32 %v1421_v44, %v889_v48 }
 0x179   : > { %v894_v50 = vsel %vm893_vm2, %v1421_v44, %v890_v49 }
 0x17a   : > { %v895_v51 = vmul.f32 %v894_v50, %v880_v38 }
 0x17c   : > { %896 = vst [vmem:[%s229_s22] sm:$0xff] %v895_v51 }
 0x17d   : > { %1509 = shalt.err (!%p1506_p13)
}
 0x17e   : > { %1349 = dma.vmem_to_hbm [thread:$0]  (%p1664_p4), %s911_s18, 128, %s913_s24, %s898_s15  }
 0x17f PF: > { %s924_s28 = sand.u32 1, %s1548_s12   ;;  %p1360_p0 = pnand %p1010_p6, %p1672_p7 }
 0x180   : > { %s925_s23 = scalar_lea.sflag [#allocation4], %s924_s28 }
 0x181   : > { %p1361_p2 = pneg %p1360_p0 }
 0x183   : > { %1543 = dma.done.wait (%p1361_p2), %s925_s23, 128  }
 0x184   : > { %1545 = vsyncadd (%p1361_p2), %s925_s23, 4294967168  ;;  %s20_s17 = sadd.s32 1, %s1568_s17   ;;  %s1760_s12 = smov %s1552_s13 }
 0x185   : > { %p17_p5 = scmp.ge.s32.totalorder %s20_s17, 4   ;;  %s1761_s13 = smov %s1556_s14 }
 0x186   : > { %s1762_s14 = smov %s1670_s8  ;;  %s1763_s15 = smov %s1564_s16 }
 0x187   : > { %s1764_s16 = smov %s1766_s29  ;;  %19 = sbr.rel (!%p17_p5) target bundleno = 7 (0x7), region = 90 }
 0x18c   :  { %931 = vsyncpa [#allocation3], 1 }
 0x18d   :  { %933 = vsyncpa [#allocation3 + $0x1], 1 }
 0x18e   :  { %934 = vsyncpa [#allocation6], 1 }
 0x18f   :  { %935 = vsyncpa [#allocation4], 1 }
 0x190   :  { %937 = vsyncpa [#allocation4 + $0x1], 1 }

</bundles_post_ra>
